<compile_context>
chip_gen: v5e
topology: v5e:2x2
jax: 0.10.0
libtpu: 0.0.40
codegen_flags: <defaults>
</compile_context>

<pallas_src>
import jax
import jax.numpy as jnp
from jax.experimental import pallas as pl
from jax.experimental.pallas import tpu as pltpu

# ----------------------------- config (small, synthetic) --------------------
VOCAB_SIZE = 64
HIDDEN_SIZE = 32
PAD_TOKEN_ID = 0
MAX_LENGTH_SIZE = 16
LAYER_NORM_EPS = 1e-12
HIDDEN_DROPOUT_PROB = 0.1   # eval-mode: dropout is identity

BATCH = 2
SEQ = 8


def _make_kernel(eps):
    def kernel(ids_ref, table_ref, ln_ref, out_ref):
        # ids_ref:   VMEM (T, 2)      int32  col 0: token id in [0, V)
        #                                    col 1: V + position (row in table)
        # table_ref: VMEM (V+L, 2*H)  f32    [word; pos] rows, each = [hi | lo]
        # ln_ref:    VMEM (2, H)      f32    row 0: gamma, row 1: beta
        # out_ref:   VMEM (T, H)      f32
        t = ids_ref.shape[0]
        vl = table_ref.shape[0]
        h = out_ref.shape[1]

        ids = ids_ref[...]                                        # (T, 2)
        iota = jax.lax.broadcasted_iota(jnp.int32, (t, vl), 1)
        # Word-id range [0, V) and offset-position range [V, V+L) are disjoint,
        # so OR-ing the two matches gives a two-hot row whose table product is
        # word_emb[id] + pos_emb[pos] in a single MXU pass.
        # (f32 one-hot keeps the code v5e-friendly; values are exact 0/1.)
        oh = ((ids[:, 0:1] == iota) | (ids[:, 1:2] == iota)).astype(jnp.float32)

        # Single default-precision MXU dot (K = V+L <= 128, N = 2H <= 128).
        g = jnp.dot(oh, table_ref[...],
                    preferred_element_type=jnp.float32)           # (T, 2H)
        x = g[:, :h] + g[:, h:]                                   # hi + lo -> f32 rows

        # --- fused LayerNorm over hidden (two-pass variance) -----------------
        mean = jnp.mean(x, axis=-1, keepdims=True)                # (T, 1)
        xc = x - mean
        var = jnp.mean(xc * xc, axis=-1, keepdims=True)           # (T, 1)
        inv = jax.lax.rsqrt(var + eps)                            # EUP
        gamma = ln_ref[0:1, :]                                    # (1, H)
        beta = ln_ref[1:2, :]                                     # (1, H)

        # TODO(synk): dropout omitted — PyTorch eval-mode nn.Dropout is identity.
        out_ref[...] = xc * (inv * gamma) + beta

    return kernel


def _pick_tile(t_total, requested=None):
    if requested is not None:
        tile = requested
    elif t_total <= 512:
        tile = t_total          # collapse grid: one step for small token counts
    else:
        tile = 512              # production: 512 rows = 2x v6e/v7x MXU row dim
    assert t_total % tile == 0, "token count must be a multiple of tile_t"
    assert tile == t_total or tile % 8 == 0, "tile_t must be a multiple of 8"
    return tile


def input_embeddings_forward(input_ids, word_emb, pos_emb, ln_gamma, ln_beta,
                             eps=LAYER_NORM_EPS, tile_t=None):
    """Pallas equivalent of InputEmbeddings.forward(input_ids) (eval mode)."""
    B, S = input_ids.shape
    V, H = word_emb.shape
    L = pos_emb.shape[0]
    T_total = B * S

    tile_t = _pick_tile(T_total, tile_t)
    grid = (T_total // tile_t,)

    # Combined gather table: rows [0, V) word embeddings, rows [V, V+L) position
    # embeddings. Each row split into bf16-exact "hi" and residual "lo" halves
    # so the default-precision (bf16-operand) MXU pass reproduces the f32 rows.
    table = jnp.concatenate([word_emb, pos_emb], axis=0).astype(jnp.float32)
    table_hi = table.astype(jnp.bfloat16).astype(jnp.float32)
    table_split = jnp.concatenate([table_hi, table - table_hi], axis=1)  # (V+L, 2H)

    # One merged int32 id stream: col 0 = token id, col 1 = V + position.
    pos = jnp.tile(jnp.arange(S, dtype=jnp.int32), B)
    ids2 = jnp.stack(
        [input_ids.reshape(T_total).astype(jnp.int32), V + pos], axis=1)  # (T, 2)

    # gamma / beta merged into one (2, H) constant-index input stream.
    ln_params = jnp.concatenate(
        [ln_gamma.reshape(1, H), ln_beta.reshape(1, H)], axis=0).astype(jnp.float32)

    kernel = _make_kernel(eps)

    out_flat = pl.pallas_call(
        kernel,
        out_shape=jax.ShapeDtypeStruct((T_total, H), jnp.float32),
        grid_spec=pltpu.PrefetchScalarGridSpec(
            num_scalar_prefetch=0,
            grid=grid,
            in_specs=[
                pl.BlockSpec((tile_t, 2), lambda i: (i, 0)),       # ids (+pos)
                pl.BlockSpec((V + L, 2 * H), lambda i: (0, 0)),    # split table
                pl.BlockSpec((2, H), lambda i: (0, 0)),            # gamma/beta
            ],
            out_specs=pl.BlockSpec((tile_t, H), lambda i: (i, 0)),
        ),
        compiler_params=pltpu.CompilerParams(
            dimension_semantics=("parallel",)),
    )(ids2, table_split, ln_params)

    return out_flat.reshape(B, S, H)


def reference_forward(input_ids, word_emb, pos_emb, ln_gamma, ln_beta,
                      eps=LAYER_NORM_EPS):
    """Pure-JAX reference matching the PyTorch forward (eval mode)."""
    B, S = input_ids.shape
    x = word_emb[input_ids] + pos_emb[jnp.arange(S)][None, :, :]
    mean = jnp.mean(x, axis=-1, keepdims=True)
    var = jnp.mean((x - mean) ** 2, axis=-1, keepdims=True)
    y = (x - mean) / jnp.sqrt(var + eps)
    return y * ln_gamma.reshape(1, 1, -1) + ln_beta.reshape(1, 1, -1)


if __name__ == "__main__":
    key = jax.random.PRNGKey(0)
    k_ids, k_word, k_pos = jax.random.split(key, 3)

    # Deterministic parameter init (BERT-style N(0, 0.02)); pad row zeroed
    # (nn.Embedding padding_idx semantics).
    word_emb = (jax.random.normal(k_word, (VOCAB_SIZE, HIDDEN_SIZE),
                                  dtype=jnp.float32) * 0.02)
    word_emb = word_emb.at[PAD_TOKEN_ID].set(0.0)
    pos_emb = (jax.random.normal(k_pos, (MAX_LENGTH_SIZE, HIDDEN_SIZE),
                                 dtype=jnp.float32) * 0.02)
    ln_gamma = jnp.ones((1, HIDDEN_SIZE), dtype=jnp.float32)
    ln_beta = jnp.zeros((1, HIDDEN_SIZE), dtype=jnp.float32)

    input_ids = jax.random.randint(k_ids, (BATCH, SEQ), 0, VOCAB_SIZE,
                                   dtype=jnp.int32)

    out = input_embeddings_forward(input_ids, word_emb, pos_emb,
                                   ln_gamma, ln_beta)
    out = jax.block_until_ready(out)

    ref = reference_forward(input_ids, word_emb, pos_emb, ln_gamma, ln_beta)
    assert out.shape == (BATCH, SEQ, HIDDEN_SIZE)
    # Tolerance covers the tiny residual from the lo-half bf16 operand rounding
    # in the default-precision MXU pass (<= ~2e-4 after LayerNorm rescaling).
    assert jnp.allclose(out, ref, atol=1e-3, rtol=1e-3)

    print("KERNEL_OK")
</pallas_src>

<mosaic_0001>
module attributes {stable_mosaic.version = 11 : i64} {
  func.func @kernel(%arg0: i32, %arg1: memref<16x2xi32, #tpu.memory_space<vmem>>, %arg2: memref<80x64xf32, #tpu.memory_space<vmem>>, %arg3: memref<2x32xf32, #tpu.memory_space<vmem>>, %arg4: memref<16x32xf32, #tpu.memory_space<vmem>>) attributes {dimension_semantics = [#tpu.dimension_semantics<parallel>], iteration_bounds = array<i64: 1>, scalar_prefetch = 0 : i64, scratch_operands = 0 : i64, tpu.core_type = #tpu.core_type<tc>, window_params = [{transform_indices = @transform_0, window_bounds = array<i64: 16, 2>}, {pipeline_mode = #tpu.pipeline_mode<synchronous>, transform_indices = @transform_1, window_bounds = array<i64: 80, 64>}, {pipeline_mode = #tpu.pipeline_mode<synchronous>, transform_indices = @transform_2, window_bounds = array<i64: 2, 32>}, {transform_indices = @transform_3, window_bounds = array<i64: 16, 32>}]} {
    %c0 = arith.constant 0 : index
    %c0_0 = arith.constant 0 : index
    %0 = vector.load %arg1[%c0, %c0_0] : memref<16x2xi32, #tpu.memory_space<vmem>>, vector<16x2xi32>
    %1 = tpu.iota {dimensions = array<i32: 1>} : vector<16x80xi32>
    %2 = vector.extract_strided_slice %0 {offsets = [0, 0], sizes = [16, 1], strides = [1, 1]} : vector<16x2xi32> to vector<16x1xi32>
    %3 = vector.broadcast %2 : vector<16x1xi32> to vector<16x80xi32>
    %4 = arith.cmpi eq, %3, %1 : vector<16x80xi32>
    %5 = vector.extract_strided_slice %0 {offsets = [0, 1], sizes = [16, 1], strides = [1, 1]} : vector<16x2xi32> to vector<16x1xi32>
    %6 = vector.broadcast %5 : vector<16x1xi32> to vector<16x80xi32>
    %7 = arith.cmpi eq, %6, %1 : vector<16x80xi32>
    %8 = arith.ori %4, %7 : vector<16x80xi1>
    %9 = arith.extui %8 : vector<16x80xi1> to vector<16x80xi32>
    %10 = arith.sitofp %9 : vector<16x80xi32> to vector<16x80xf32>
    %c0_1 = arith.constant 0 : index
    %c0_2 = arith.constant 0 : index
    %11 = vector.load %arg2[%c0_1, %c0_2] : memref<80x64xf32, #tpu.memory_space<vmem>>, vector<80x64xf32>
    %cst = arith.constant dense<0.000000e+00> : vector<16x64xf32>
    %12 = tpu.matmul %10, %11, %cst {dimension_numbers = #tpu.dot_dimension_numbers<[1], [0], [0], [1], [0, 0, 1, 1], [], []>} : vector<16x80xf32>, vector<80x64xf32>, vector<16x64xf32> -> vector<16x64xf32>
    %13 = vector.extract_strided_slice %12 {offsets = [0, 0], sizes = [16, 32], strides = [1, 1]} : vector<16x64xf32> to vector<16x32xf32>
    %14 = vector.extract_strided_slice %12 {offsets = [0, 32], sizes = [16, 32], strides = [1, 1]} : vector<16x64xf32> to vector<16x32xf32>
    %15 = arith.addf %13, %14 : vector<16x32xf32>
    %cst_3 = arith.constant dense<0.000000e+00> : vector<16xf32>
    %16 = vector.multi_reduction <add>, %15, %cst_3 [1] : vector<16x32xf32> to vector<16xf32>
    %17 = vector.shape_cast %16 : vector<16xf32> to vector<16x1xf32>
    %cst_4 = arith.constant 3.200000e+01 : f32
    %18 = vector.broadcast %cst_4 : f32 to vector<16x1xf32>
    %19 = arith.divf %17, %18 : vector<16x1xf32>
    %20 = vector.broadcast %19 : vector<16x1xf32> to vector<16x32xf32>
    %21 = arith.subf %15, %20 : vector<16x32xf32>
    %22 = arith.mulf %21, %21 : vector<16x32xf32>
    %cst_5 = arith.constant dense<0.000000e+00> : vector<16xf32>
    %23 = vector.multi_reduction <add>, %22, %cst_5 [1] : vector<16x32xf32> to vector<16xf32>
    %24 = vector.shape_cast %23 : vector<16xf32> to vector<16x1xf32>
    %cst_6 = arith.constant 3.200000e+01 : f32
    %25 = vector.broadcast %cst_6 : f32 to vector<16x1xf32>
    %26 = arith.divf %24, %25 : vector<16x1xf32>
    %cst_7 = arith.constant 9.99999996E-13 : f32
    %27 = vector.broadcast %cst_7 : f32 to vector<16x1xf32>
    %28 = arith.addf %26, %27 : vector<16x1xf32>
    %29 = math.rsqrt %28 : vector<16x1xf32>
    %c0_8 = arith.constant 0 : index
    %c0_9 = arith.constant 0 : index
    %30 = vector.load %arg3[%c0_8, %c0_9] : memref<2x32xf32, #tpu.memory_space<vmem>>, vector<1x32xf32>
    %c1 = arith.constant 1 : index
    %c0_10 = arith.constant 0 : index
    %31 = vector.load %arg3[%c1, %c0_10] : memref<2x32xf32, #tpu.memory_space<vmem>>, vector<1x32xf32>
    %32 = vector.broadcast %29 : vector<16x1xf32> to vector<16x32xf32>
    %33 = vector.broadcast %30 : vector<1x32xf32> to vector<16x32xf32>
    %34 = arith.mulf %32, %33 : vector<16x32xf32>
    %35 = arith.mulf %21, %34 : vector<16x32xf32>
    %36 = vector.broadcast %31 : vector<1x32xf32> to vector<16x32xf32>
    %37 = arith.addf %35, %36 : vector<16x32xf32>
    %c0_11 = arith.constant 0 : index
    %c0_12 = arith.constant 0 : index
    %38 = vector.load %arg4[%c0_11, %c0_12] : memref<16x32xf32, #tpu.memory_space<vmem>>, vector<16x32xf32>
    tpu.vector_store %arg4[%c0_11, %c0_12], %37 {strides = array<i32>} : memref<16x32xf32, #tpu.memory_space<vmem>>, vector<16x32xf32>,
    return
  }
  func.func @transform_0(%arg0: i32) -> (i32, i32) {
    %c0_i32 = arith.constant 0 : i32
    %c0_i32_0 = arith.constant 0 : i32
    return %arg0, %c0_i32 : i32, i32
  }
  func.func @transform_1(%arg0: i32) -> (i32, i32) {
    %c0_i32 = arith.constant 0 : i32
    %c0_i32_0 = arith.constant 0 : i32
    %c0_i32_1 = arith.constant 0 : i32
    return %c0_i32, %c0_i32_0 : i32, i32
  }
  func.func @transform_2(%arg0: i32) -> (i32, i32) {
    %c0_i32 = arith.constant 0 : i32
    %c0_i32_0 = arith.constant 0 : i32
    %c0_i32_1 = arith.constant 0 : i32
    return %c0_i32, %c0_i32_0 : i32, i32
  }
  func.func @transform_3(%arg0: i32) -> (i32, i32) {
    %c0_i32 = arith.constant 0 : i32
    %c0_i32_0 = arith.constant 0 : i32
    return %arg0, %c0_i32 : i32, i32
  }
}

</mosaic_0001>

<bundles_post_ra>
// kernel: tpu_custom_call.1
= control target key start
LH: loop header
LB: loop body
LE: loop exit
PB: predicated region body
PF: predicated region fallthrough
CT: control target
= control target key end

     0   :  { %v230_v2 = vmov 1   ;;  %v231_v3 = vmov 0   ;;  %s309_s0 = inlined_call_operand.vmem [shape: s32[16,2], index: 0, kind: input, shape index: {}]   ;;  %s310_s1 = inlined_call_operand.vmem [shape: f32[80,64], index: 1, kind: input, shape index: {}]   ;;  %s311_s2 = inlined_call_operand.vmem [shape: f32[2,32], index: 2, kind: input, shape index: {}]   ;;  %s312_s3 = inlined_call_operand.hbm [shape: f32[16,32], index: 3, kind: output, shape index: {}]  }
   0x1   :  { %v15_v0 = vld [vmem:[%s309_s0] sm:$0xff]  ;;  %v50_v1 = vld [vmem:[%s310_s1 + $0x48] sm:$0xff]  ;;  %194 = vset.pattern.permute.xlu1 %v230_v2  ;;  %193 = vset.pattern.permute.xlu0 %v231_v3 }
   0x2   :  { %28 = vperm.xlu1 %194, %v15_v0   ;;  %20 = vperm.xlu0 %193, %v15_v0   ;;  %v49_v4 = vld [vmem:[%s310_s1 + $0x40] sm:$0xff] }
   0x3   :  { %64 = vmatpush.msra.mxu0 %v50_v1  ;;  %175 = vmatpush.msra.mxu1 %v50_v1 }
   0x4   :  { %8 = vsyncpa [#allocation3], 0  ;;  %v48_v5 = vld [vmem:[%s310_s1 + $0x38] sm:$0xff]  ;;  %v47_v6 = vld [vmem:[%s310_s1 + $0x30] sm:$0xff]  ;;  %v17_v14 = vlaneseq  ;;  %vm51_vm2 = vcmask 654336   ;;  %v232_v18 = vmov 0.0  }
   0x5   :  { %65 = vmatpush.msra.mxu0 %v49_v4  ;;  %176 = vmatpush.msra.mxu1 %v49_v4  ;;  %v16_v7 = vld [vmem:[%s309_s0 + $0x8] sm:$0xff]  ;;  %v45_v9 = vld [vmem:[%s310_s1 + $0x20] sm:$0xff]  ;;  %v44_v10 = vld [vmem:[%s310_s1 + $0x18] sm:$0xff]  ;;  %vm91_vm7 = vcmask 261120   ;;  %v234_v31 = vmov 32.0   ;;  %s235_s12 = smov [#allocation2]  }
   0x6   :  { %v46_v8 = vld [vmem:[%s310_s1 + $0x28] sm:$0xff]  ;;  %v43_v11 = vld [vmem:[%s310_s1 + $0x10] sm:$0xff]  ;;  %v41_v13 = vld [vmem:[%s310_s1] sm:$0xff]  ;;  %v18_v15 = vand.u32 127, %v17_v14  ;;  %198 = vrcp.f32 %v234_v31  ;;  %s157_s13 = sshll.u32 %s235_s12, 4  ;;  %s159_s16 = sshll.u32 %s312_s3, 4  ;;  %s158_s13 = int_to_ptr.vmem [resolvable:$true] %s157_s13  ;;  %s160_s16 = int_to_ptr.hbm [resolvable:$true] %s159_s16 }
   0x7   :  { %66 = vmatpush.msra.mxu0 %v48_v5  ;;  %177 = vmatpush.msra.mxu1 %v48_v5  ;;  %v42_v12 = vld [vmem:[%s310_s1 + $0x8] sm:$0xff]  ;;  %s233_s1 = smov 96   ;;  %v196_v60 = vld [vmem:[%s311_s2] ss:$0 sm:$0xff]  ;;  %s237_s17 = smov 8  }
   0x9   :  { %67 = vmatpush.msra.mxu0 %v47_v6  ;;  %178 = vmatpush.msra.mxu1 %v47_v6 }
   0xa   :  { %31 = vperm.xlu1 %194, %v16_v7   ;;  %23 = vperm.xlu0 %193, %v16_v7  }
   0xb   :  { %68 = vmatpush.msra.mxu0 %v46_v8  ;;  %179 = vmatpush.msra.mxu1 %v46_v8 }
   0xc   :  { %v199_v32 = vpop.eup %198 }
   0xd   :  { %69 = vmatpush.msra.mxu0 %v45_v9  ;;  %180 = vmatpush.msra.mxu1 %v45_v9  ;;  %v99_v33 = vmul.f32 32.0, %v199_v32  ;;  %vm103_vm8 = vweird.f32 %v199_v32 }
   0xf   :  { %70 = vmatpush.msra.mxu0 %v44_v10  ;;  %181 = vmatpush.msra.mxu1 %v44_v10  ;;  %v100_v34 = vsub.f32 1.0, %v99_v33 }
  0x11   :  { %71 = vmatpush.msra.mxu0 %v43_v11  ;;  %182 = vmatpush.msra.mxu1 %v43_v11  ;;  %v101_v35 = vmul.f32 %v199_v32, %v100_v34 }
  0x12   :  { %195 = vset.pattern.permute.xlu0 %v230_v2  ;;  %v197_v2 = vld [vmem:[%s311_s2 + $0x1] ss:$0 sm:$0xff]  ;;  %s236_s2 = smov 128  }
  0x13   :  { %72 = vmatpush.msra.mxu0 %v42_v12  ;;  %183 = vmatpush.msra.mxu1 %v42_v12  ;;  %v102_v36 = vadd.f32 %v199_v32, %v101_v35 }
  0x15   :  { %73 = vmatpush.msra.mxu0 %v41_v13  ;;  %184 = vmatpush.msra.mxu1 %v41_v13  ;;  %v104_v37 = vsel %vm103_vm8, %v199_v32, %v102_v36 }
  0x74   :  { %v29_v16 = vpop.permute.xlu1 %28  ;;  %v21_v17 = vpop.permute.xlu0 %20 }
  0x75   :  { %vm33_vm0 = vcmp.eq.s32.totalorder %v29_v16, %v18_v15  ;;  %vm25_vm1 = vcmp.eq.s32.totalorder %v21_v17, %v18_v15 }
  0x76   :  { %vm35_vm3 = vmor %vm25_vm1, %vm33_vm0 }
  0x77   :  { %v171_v19 = vsel %vm35_vm3, 1.0, %v232_v18 }
  0x78   :  { %173 = vmatmul.msk.f32.vlgmr.msra.gmra.mxu0 %vm51_vm2, %v171_v19 }
  0x7c   :  { %v32_v20 = vpop.permute.xlu1 %31  ;;  %v24_v21 = vpop.permute.xlu0 %23 }
  0x7d   :  { %vm34_vm4 = vcmp.eq.s32.totalorder %v32_v20, %v18_v15  ;;  %vm26_vm5 = vcmp.eq.s32.totalorder %v24_v21, %v18_v15 }
  0x7e   :  { %vm36_vm6 = vmor %vm26_vm5, %vm34_vm4 }
  0x7f   :  { %v172_v22 = vsel %vm36_vm6, 1.0, %v232_v18 }
  0x80   :  { %174 = vmatmul.msk.f32.vlgmr.msra.gmra.mxu1 %vm51_vm2, %v172_v22 }
  0xf5   :  { %v75_v23 = vpop.f32.mrf.mxu0 }
  0xf6   :  { %83 = vrot.lane.b32.xlu2 %v75_v23, %s233_s1 }
  0xfd   :  { %v78_v24 = vpop.f32.mrf.mxu1 }
  0xfe   :  { %85 = vrot.lane.b32.xlu2 %v78_v24, %s233_s1 }
 0x150   :  { %v84_v25 = vpop.permute.xlu2 %83 }
 0x151   :  { %v89_v26 = vadd.f32 %v84_v25, %v75_v23 }
 0x153   :  { %v92_v27 = vsel %vm91_vm7, %v89_v26, 0.0 }
 0x154   :  { %93 = vadd.xlane.f32.xlu0 %v92_v27 }
 0x158   :  { %v86_v28 = vpop.permute.xlu2 %85 }
 0x159   :  { %v90_v29 = vadd.f32 %v86_v28, %v78_v24 }
 0x15b   :  { %v95_v30 = vsel %vm91_vm7, %v90_v29, 0.0 }
 0x15c   :  { %96 = vadd.xlane.f32.xlu1 %v95_v30 }
 0x1c7   :  { %v94_v38 = vpop.xlane.xlu0 %93 }
 0x1c8   :  { %v105_v39 = vmul.f32 %v104_v37, %v94_v38 }
 0x1ca   :  { %v107_v40 = vsub.f32 %v89_v26, %v105_v39 }
 0x1cc   :  { %v109_v41 = vmul.f32 %v107_v40, %v107_v40 }
 0x1ce   :  { %v111_v42 = vsel %vm91_vm7, %v109_v41, 0.0 }
 0x1cf   :  { %v97_v43 = vpop.xlane.xlu1 %96  ;;  %112 = vadd.xlane.f32.xlu2 %v111_v42 }
 0x1d0   :  { %v106_v44 = vmul.f32 %v104_v37, %v97_v43 }
 0x1d2   :  { %v108_v45 = vsub.f32 %v90_v29, %v106_v44 }
 0x1d4   :  { %v110_v46 = vmul.f32 %v108_v45, %v108_v45 }
 0x1d6   :  { %v114_v47 = vsel %vm91_vm7, %v110_v46, 0.0 }
 0x1d7   :  { %115 = vadd.xlane.f32.xlu2 %v114_v47 }
 0x242   :  { %v113_v48 = vpop.xlane.xlu2 %112 }
 0x243   :  { %v117_v49 = vmul.f32 %v113_v48, %v104_v37 }
 0x245   :  { %v119_v50 = vadd.f32 1e-12, %v117_v49 }
 0x247   :  { %200 = vrsqrt.f32 %v119_v50  ;;  %vm127_vm10 = vweird.f32 %v119_v50 }
 0x24a   :  { %v116_v51 = vpop.xlane.xlu2 %115 }
 0x24b   :  { %v118_v52 = vmul.f32 %v116_v51, %v104_v37 }
 0x24d   :  { %v201_v53 = vpop.eup %200  ;;  %v120_v54 = vadd.f32 1e-12, %v118_v52 }
 0x24e   :  { %v122_v55 = vmul.f32 %v201_v53, %v119_v50  ;;  %vm128_vm9 = vweird.f32 %v201_v53 }
 0x24f   :  { %202 = vrsqrt.f32 %v120_v54  ;;  %vm129_vm11 = vmor %vm127_vm10, %vm128_vm9  ;;  %vm137_vm13 = vweird.f32 %v120_v54 }
 0x250   :  { %v123_v56 = vmul.f32 %v201_v53, %v122_v55 }
 0x252   :  { %v124_v57 = vmul.f32 0.5, %v123_v56 }
 0x254   :  { %v125_v58 = vsub.f32 1.5, %v124_v57 }
 0x255   :  { %v203_v59 = vpop.eup %202 }
 0x256   :  { %v126_v61 = vmul.f32 %v201_v53, %v125_v58  ;;  %v132_v62 = vmul.f32 %v203_v59, %v120_v54  ;;  %vm138_vm12 = vweird.f32 %v203_v59 }
 0x257   :  { %vm139_vm14 = vmor %vm137_vm13, %vm138_vm12 }
 0x258   :  { %v130_v63 = vsel %vm129_vm11, %v201_v53, %v126_v61  ;;  %v133_v0 = vmul.f32 %v203_v59, %v132_v62 }
 0x259   :  { %v144_v1 = vmul.f32 %v196_v60, %v130_v63 }
 0x25a   :  { %v134_v3 = vmul.f32 0.5, %v133_v0 }
 0x25b   :  { %v146_v4 = vmul.f32 %v144_v1, %v107_v40 }
 0x25c   :  { %v135_v5 = vsub.f32 1.5, %v134_v3 }
 0x25d   :  { %v149_v6 = vadd.f32 %v197_v2, %v146_v4 }
 0x25e   :  { %v136_v7 = vmul.f32 %v203_v59, %v135_v5 }
 0x25f   :  { %151 = vst.msk [vmem:[#allocation2] sm:$0xff] %vm91_vm7, %v149_v6 }
 0x260   :  { %v140_v8 = vsel %vm139_vm14, %v203_v59, %v136_v7 }
 0x261   :  { %v145_v9 = vmul.f32 %v196_v60, %v140_v8 }
 0x263   :  { %v147_v10 = vmul.f32 %v145_v9, %v108_v45 }
 0x265   :  { %v150_v11 = vadd.f32 %v197_v2, %v147_v10 }
 0x267   :  { %152 = vst.msk [vmem:[#allocation2 + $0x8] sm:$0xff] %vm91_vm7, %v150_v11 }
 0x268   :  { %165 = dma.vmem_to_hbm [thread:$0]  %s158_s13, 256, %s160_s16, [#allocation3], %s236_s2, %s236_s2, %s237_s17  }
 0x269   :  { %228 = dma.done.wait [#allocation3], 256  }
 0x26a   :  { %229 = vsyncadd [#allocation3], 4294967040 }
 0x26b   :  { %170 = vsyncpa [#allocation3], 1 }

</bundles_post_ra>
